<compile_context>
chip_gen: v7x
topology: tpu7x:2x2x1
jax: 0.10.0
libtpu: 0.0.40
codegen_flags: <defaults>
</compile_context>

<pallas_src>
import jax
import jax.numpy as jnp
from jax.experimental import pallas as pl
from jax.experimental.pallas import tpu as pltpu


LANE = 128              # TPU vreg lane width
MAX_TOKEN_BLOCK = 8192  # tokens (lanes) per grid step; a few MiB of VMEM max


def _critic_kernel(xs_ref, xd_ref,
                   w1s_ref, w1d_ref, b1_ref,
                   w2_ref, b2_ref, w3_ref, b3_ref,
                   out_ref):
    """One grid step == one (tour step, token-block) pair.

    Layout: channels on sublanes, tokens on lanes (token = (b, l)).
      xs_ref : (S, TB)     bf16 static features  (reused across tour steps)
      xd_ref : (1, D, TB)  bf16 dynamic features for this tour step
      w1s/w1d: (H, S)/(H, D) f32 fused encoder+fc1 weights; b1: (H, 1)
      w2/b2  : (20, H)/(20, 1);  w3/b3: (20, 1)/(1, 1)
      out_ref: (1, 1, TB)  per-token fc3 output (L-sum done in the wrapper)
    """
    f32 = jnp.float32
    xs = xs_ref[...].astype(f32)          # (S, TB)
    xd = xd_ref[0].astype(f32)            # (D, TB)

    # Fused encoders + fc1 (exact algebraic fusion; no activation in between).
    h1 = jnp.maximum(
        jnp.dot(w1s_ref[...], xs, preferred_element_type=f32)
        + jnp.dot(w1d_ref[...], xd, preferred_element_type=f32)
        + b1_ref[...], 0.0)                                                 # (H, TB)

    h2 = jnp.maximum(
        jnp.dot(w2_ref[...], h1, preferred_element_type=f32) + b2_ref[...], 0.0)  # (20, TB)

    # fc3 (20 -> 1): VPU multiply + sublane reduce instead of a degenerate N=1 matmul.
    out_ref[0] = jnp.sum(h2 * w3_ref[...], axis=0, keepdims=True) + b3_ref[...]   # (1, TB)


def _round_up(x, m):
    return -(-x // m) * m


def _num_tensorcores_per_chip():
    """Best-effort TC count (v7x has 2 per chip); defaults to 1."""
    try:
        kind = jax.devices()[0].device_kind.lower()
    except Exception:
        return 1
    return 2 if "7" in kind else 1


def _choose_token_block(bl, t, multi_tc):
    """Lane-block size for the (b, l) token axis."""
    n_blk = max(1, -(-bl // MAX_TOKEN_BLOCK))
    if multi_tc and t == 1 and n_blk == 1 and bl > LANE:
        n_blk = 2                       # give both v7x TensorCores a block
    blk = _round_up(-(-bl // n_blk), LANE)
    return min(blk, _round_up(bl, LANE))


def critic_forward(static_ncl, tour_dynamic_ntcl, params):
    """static_ncl: (B, S, L) f32;  tour_dynamic_ntcl: (B, T, D, L) f32.
    Returns (B, T) f32, matching the PyTorch Critic.forward output."""
    B, S, L = static_ncl.shape
    _, T, D, _ = tour_dynamic_ntcl.shape
    H = params["ws"].shape[1]
    BL = B * L

    # ---- Exact algebraic fusion of the k=1 Conv encoders into fc1 (done once,
    #      in f32 at HIGHEST precision; weights are tiny).
    hi = jax.lax.Precision.HIGHEST
    w1s_f = jnp.dot(params["w1s"].T, params["ws"].T, precision=hi)       # (H, S)
    w1d_f = jnp.dot(params["w1d"].T, params["wd"].T, precision=hi)       # (H, D)
    b1_f = (jnp.dot(params["bs"], params["w1s"], precision=hi)
            + jnp.dot(params["bd"], params["w1d"], precision=hi)
            + params["b1"]).T                                            # (H, 1)
    w2_t, b2_t = params["w2"].T, params["b2"].T                          # (20,H),(20,1)
    w3_c, b3_c = params["w3"], params["b3"]                              # (20,1),(1,1)

    # ---- Layout plumbing (once, in XLA): channels on sublanes, tokens on lanes.
    #      Static is laid out per (b, l) only -- NOT broadcast over tour steps;
    #      the kernel reuses the same static block across the T grid axis.
    #      Cast to bf16 before the transpose so the materialized copy is half-size.
    xs = jnp.transpose(static_ncl.astype(jnp.bfloat16), (1, 0, 2)).reshape(S, BL)
    xd = jnp.transpose(tour_dynamic_ntcl.astype(jnp.bfloat16),
                       (1, 2, 0, 3)).reshape(T, D, BL)

    multi_tc = _num_tensorcores_per_chip() > 1
    blk = _choose_token_block(BL, T, multi_tc)
    bl_pad = _round_up(BL, blk)
    num_bl = bl_pad // blk

    if bl_pad != BL:
        xs = jnp.pad(xs, ((0, 0), (0, bl_pad - BL)))
        xd = jnp.pad(xd, ((0, 0), (0, 0), (0, bl_pad - BL)))

    full = lambda shape: pl.BlockSpec(shape, lambda i, t: (0,) * len(shape))

    grid_spec = pltpu.PrefetchScalarGridSpec(
        num_scalar_prefetch=0,
        grid=(num_bl, T),                                   # T innermost: static reuse
        in_specs=[
            pl.BlockSpec((S, blk), lambda i, t: (0, i)),       # static (reused over t)
            pl.BlockSpec((1, D, blk), lambda i, t: (t, 0, i)),  # dynamic tokens
            full((H, S)), full((H, D)), full((H, 1)),           # fused encoder+fc1
            full((20, H)), full((20, 1)),                       # fc2
            full((20, 1)), full((1, 1)),                        # fc3
        ],
        out_specs=pl.BlockSpec((1, 1, blk), lambda i, t: (t, 0, i)),
    )

    out_tok = pl.pallas_call(
        _critic_kernel,
        out_shape=jax.ShapeDtypeStruct((T, 1, bl_pad), jnp.float32),
        grid_spec=grid_spec,
        compiler_params=pltpu.CompilerParams(
            dimension_semantics=("parallel", "parallel")),   # megacore shards on v7x
    )(xs, xd,
      w1s_f, w1d_f, b1_f,
      w2_t, b2_t, w3_c, b3_c)

    # Sum over positions L (tiny tensor; done in XLA so the kernel output stays
    # lane-dense).  Padded token columns are dropped before the sum.
    return out_tok[:, 0, :BL].reshape(T, B, L).sum(axis=-1).T            # (B, T)


def make_params(key, static_size, dynamic_size, hidden_size):
    """Deterministic synthetic params. Weights stored as (C_in, C_out)."""
    ks = jax.random.split(key, 10)

    def xavier(k, cin, cout):
        limit = jnp.sqrt(6.0 / (cin + cout))
        return jax.random.uniform(k, (cin, cout), jnp.float32, -limit, limit)

    H = hidden_size
    w1_full = xavier(ks[2], 2 * H, H)  # fc1 acts on cat(static, dynamic)
    return dict(
        ws=xavier(ks[0], static_size, H),
        bs=jax.random.normal(ks[5], (1, H), jnp.float32) * 0.01,
        wd=xavier(ks[1], dynamic_size, H),
        bd=jax.random.normal(ks[6], (1, H), jnp.float32) * 0.01,
        w1s=w1_full[:H, :],
        w1d=w1_full[H:, :],
        b1=jax.random.normal(ks[7], (1, H), jnp.float32) * 0.01,
        w2=xavier(ks[3], H, 20),
        b2=jax.random.normal(ks[8], (1, 20), jnp.float32) * 0.01,
        w3=xavier(ks[4], 20, 1),
        b3=jax.random.normal(ks[9], (1, 1), jnp.float32) * 0.01,
    )


def critic_reference(static_ncl, tour_dynamic_ntcl, params):
    """Pure-JAX reference mirroring the PyTorch forward (for correctness check)."""
    static_cl = jnp.transpose(static_ncl, (0, 2, 1))
    tour_cl = jnp.transpose(tour_dynamic_ntcl, (0, 1, 3, 2))
    sh = static_cl @ params["ws"] + params["bs"]
    outs = []
    for i in range(tour_cl.shape[1]):
        dh = tour_cl[:, i] @ params["wd"] + params["bd"]
        h1 = jax.nn.relu(sh @ params["w1s"] + dh @ params["w1d"] + params["b1"])
        h2 = jax.nn.relu(h1 @ params["w2"] + params["b2"])
        o = (h2 @ params["w3"] + params["b3"]).sum(axis=1)  # sum over L -> (B, 1)
        outs.append(o)
    return jnp.concatenate(outs, axis=1)


if __name__ == "__main__":
    B, L, T = 2, 16, 8
    static_size, dynamic_size, hidden_size = 4, 3, 32

    key = jax.random.PRNGKey(0)
    k_static, k_dyn, k_params = jax.random.split(key, 3)

    static = jax.random.normal(k_static, (B, static_size, L), jnp.float32)
    tour_dynamic = jax.random.normal(k_dyn, (B, T, dynamic_size, L), jnp.float32)
    params = make_params(k_params, static_size, dynamic_size, hidden_size)

    out = jax.block_until_ready(critic_forward(static, tour_dynamic, params))

    # The kernel streams activations in bf16 (HBM-traffic optimization), so the
    # correctness check compares against the f32 reference evaluated on the same
    # bf16-rounded inputs: this isolates kernel math (fusion, layout, matmuls)
    # from the intentional input quantization.
    static_q = static.astype(jnp.bfloat16).astype(jnp.float32)
    dyn_q = tour_dynamic.astype(jnp.bfloat16).astype(jnp.float32)
    ref = critic_reference(static_q, dyn_q, params)

    assert out.shape == (B, T), out.shape
    assert jnp.allclose(out, ref, atol=1e-2, rtol=1e-2), (out, ref)

    print("KERNEL_OK")
</pallas_src>

<mosaic_0001>
module attributes {stable_mosaic.version = 11 : i64} {
  func.func @_critic_kernel(%arg0: i32, %arg1: i32, %arg2: memref<4x128xbf16, #tpu.memory_space<vmem>>, %arg3: memref<1x3x128xbf16, #tpu.memory_space<vmem>>, %arg4: memref<32x4xf32, #tpu.memory_space<vmem>>, %arg5: memref<32x3xf32, #tpu.memory_space<vmem>>, %arg6: memref<32x1xf32, #tpu.memory_space<vmem>>, %arg7: memref<20x32xf32, #tpu.memory_space<vmem>>, %arg8: memref<20x1xf32, #tpu.memory_space<vmem>>, %arg9: memref<20x1xf32, #tpu.memory_space<vmem>>, %arg10: memref<1x1xf32, #tpu.memory_space<vmem>>, %arg11: memref<1x1x128xf32, #tpu.memory_space<vmem>>) attributes {dimension_semantics = [#tpu.dimension_semantics<parallel>, #tpu.dimension_semantics<parallel>], iteration_bounds = array<i64: 1, 8>, scalar_prefetch = 0 : i64, scratch_operands = 0 : i64, tpu.core_type = #tpu.core_type<tc>, window_params = [{transform_indices = @transform_0, window_bounds = array<i64: 4, 128>}, {transform_indices = @transform_1, window_bounds = array<i64: 1, 3, 128>}, {pipeline_mode = #tpu.pipeline_mode<synchronous>, transform_indices = @transform_2, window_bounds = array<i64: 32, 4>}, {pipeline_mode = #tpu.pipeline_mode<synchronous>, transform_indices = @transform_3, window_bounds = array<i64: 32, 3>}, {pipeline_mode = #tpu.pipeline_mode<synchronous>, transform_indices = @transform_4, window_bounds = array<i64: 32, 1>}, {pipeline_mode = #tpu.pipeline_mode<synchronous>, transform_indices = @transform_5, window_bounds = array<i64: 20, 32>}, {pipeline_mode = #tpu.pipeline_mode<synchronous>, transform_indices = @transform_6, window_bounds = array<i64: 20, 1>}, {pipeline_mode = #tpu.pipeline_mode<synchronous>, transform_indices = @transform_7, window_bounds = array<i64: 20, 1>}, {pipeline_mode = #tpu.pipeline_mode<synchronous>, transform_indices = @transform_8, window_bounds = array<i64: 1, 1>}, {transform_indices = @transform_9, window_bounds = array<i64: 1, 1, 128>}]} {
    %c0 = arith.constant 0 : index
    %c0_0 = arith.constant 0 : index
    %0 = vector.load %arg2[%c0, %c0_0] : memref<4x128xbf16, #tpu.memory_space<vmem>>, vector<4x128xbf16>
    %1 = arith.extf %0 : vector<4x128xbf16> to vector<4x128xf32>
    %c0_1 = arith.constant 0 : index
    %c0_2 = arith.constant 0 : index
    %c0_3 = arith.constant 0 : index
    %2 = vector.load %arg3[%c0_1, %c0_2, %c0_3] : memref<1x3x128xbf16, #tpu.memory_space<vmem>>, vector<1x3x128xbf16>
    %3 = vector.shape_cast %2 : vector<1x3x128xbf16> to vector<3x128xbf16>
    %4 = arith.extf %3 : vector<3x128xbf16> to vector<3x128xf32>
    %c0_4 = arith.constant 0 : index
    %c0_5 = arith.constant 0 : index
    %5 = vector.load %arg4[%c0_4, %c0_5] : memref<32x4xf32, #tpu.memory_space<vmem>>, vector<32x4xf32>
    %cst = arith.constant dense<0.000000e+00> : vector<32x128xf32>
    %6 = tpu.matmul %5, %1, %cst {dimension_numbers = #tpu.dot_dimension_numbers<[1], [0], [0], [1], [0, 0, 1, 1], [], []>} : vector<32x4xf32>, vector<4x128xf32>, vector<32x128xf32> -> vector<32x128xf32>
    %c0_6 = arith.constant 0 : index
    %c0_7 = arith.constant 0 : index
    %7 = vector.load %arg5[%c0_6, %c0_7] : memref<32x3xf32, #tpu.memory_space<vmem>>, vector<32x3xf32>
    %cst_8 = arith.constant dense<0.000000e+00> : vector<32x128xf32>
    %8 = tpu.matmul %7, %4, %cst_8 {dimension_numbers = #tpu.dot_dimension_numbers<[1], [0], [0], [1], [0, 0, 1, 1], [], []>} : vector<32x3xf32>, vector<3x128xf32>, vector<32x128xf32> -> vector<32x128xf32>
    %9 = arith.addf %6, %8 : vector<32x128xf32>
    %c0_9 = arith.constant 0 : index
    %c0_10 = arith.constant 0 : index
    %10 = vector.load %arg6[%c0_9, %c0_10] : memref<32x1xf32, #tpu.memory_space<vmem>>, vector<32x1xf32>
    %11 = vector.broadcast %10 : vector<32x1xf32> to vector<32x128xf32>
    %12 = arith.addf %9, %11 : vector<32x128xf32>
    %cst_11 = arith.constant 0.000000e+00 : f32
    %13 = vector.broadcast %cst_11 : f32 to vector<32x128xf32>
    %14 = arith.maximumf %12, %13 : vector<32x128xf32>
    %c0_12 = arith.constant 0 : index
    %c0_13 = arith.constant 0 : index
    %15 = vector.load %arg7[%c0_12, %c0_13] : memref<20x32xf32, #tpu.memory_space<vmem>>, vector<20x32xf32>
    %cst_14 = arith.constant dense<0.000000e+00> : vector<20x128xf32>
    %16 = tpu.matmul %15, %14, %cst_14 {dimension_numbers = #tpu.dot_dimension_numbers<[1], [0], [0], [1], [0, 0, 1, 1], [], []>} : vector<20x32xf32>, vector<32x128xf32>, vector<20x128xf32> -> vector<20x128xf32>
    %c0_15 = arith.constant 0 : index
    %c0_16 = arith.constant 0 : index
    %17 = vector.load %arg8[%c0_15, %c0_16] : memref<20x1xf32, #tpu.memory_space<vmem>>, vector<20x1xf32>
    %18 = vector.broadcast %17 : vector<20x1xf32> to vector<20x128xf32>
    %19 = arith.addf %16, %18 : vector<20x128xf32>
    %cst_17 = arith.constant 0.000000e+00 : f32
    %20 = vector.broadcast %cst_17 : f32 to vector<20x128xf32>
    %21 = arith.maximumf %19, %20 : vector<20x128xf32>
    %c0_18 = arith.constant 0 : index
    %c0_19 = arith.constant 0 : index
    %22 = vector.load %arg9[%c0_18, %c0_19] : memref<20x1xf32, #tpu.memory_space<vmem>>, vector<20x1xf32>
    %23 = vector.broadcast %22 : vector<20x1xf32> to vector<20x128xf32>
    %24 = arith.mulf %21, %23 : vector<20x128xf32>
    %cst_20 = arith.constant dense<0.000000e+00> : vector<128xf32>
    %25 = vector.multi_reduction <add>, %24, %cst_20 [0] : vector<20x128xf32> to vector<128xf32>
    %26 = vector.shape_cast %25 : vector<128xf32> to vector<1x128xf32>
    %c0_21 = arith.constant 0 : index
    %c0_22 = arith.constant 0 : index
    %27 = vector.load %arg10[%c0_21, %c0_22] : memref<1x1xf32, #tpu.memory_space<vmem>>, vector<1x1xf32>
    %28 = vector.broadcast %27 : vector<1x1xf32> to vector<1x128xf32>
    %29 = arith.addf %26, %28 : vector<1x128xf32>
    %c0_23 = arith.constant 0 : index
    %c0_24 = arith.constant 0 : index
    %c0_25 = arith.constant 0 : index
    %30 = vector.load %arg11[%c0_23, %c0_24, %c0_25] : memref<1x1x128xf32, #tpu.memory_space<vmem>>, vector<1x1x128xf32>
    %31 = vector.shape_cast %30 : vector<1x1x128xf32> to vector<1x128xf32>
    %32 = vector.shape_cast %29 : vector<1x128xf32> to vector<1x1x128xf32>
    tpu.vector_store %arg11[%c0_23, %c0_24, %c0_25], %32 {strides = array<i32>} : memref<1x1x128xf32, #tpu.memory_space<vmem>>, vector<1x1x128xf32>,
    return
  }
  func.func @transform_0(%arg0: i32, %arg1: i32) -> (i32, i32) {
    %c0_i32 = arith.constant 0 : i32
    %c0_i32_0 = arith.constant 0 : i32
    return %c0_i32, %arg0 : i32, i32
  }
  func.func @transform_1(%arg0: i32, %arg1: i32) -> (i32, i32, i32) {
    %c0_i32 = arith.constant 0 : i32
    %c0_i32_0 = arith.constant 0 : i32
    return %arg1, %c0_i32, %arg0 : i32, i32, i32
  }
  func.func @transform_2(%arg0: i32, %arg1: i32) -> (i32, i32) {
    %c0_i32 = arith.constant 0 : i32
    %c0_i32_0 = arith.constant 0 : i32
    %c0_i32_1 = arith.constant 0 : i32
    return %c0_i32, %c0_i32_0 : i32, i32
  }
  func.func @transform_3(%arg0: i32, %arg1: i32) -> (i32, i32) {
    %c0_i32 = arith.constant 0 : i32
    %c0_i32_0 = arith.constant 0 : i32
    %c0_i32_1 = arith.constant 0 : i32
    return %c0_i32, %c0_i32_0 : i32, i32
  }
  func.func @transform_4(%arg0: i32, %arg1: i32) -> (i32, i32) {
    %c0_i32 = arith.constant 0 : i32
    %c0_i32_0 = arith.constant 0 : i32
    %c0_i32_1 = arith.constant 0 : i32
    return %c0_i32, %c0_i32_0 : i32, i32
  }
  func.func @transform_5(%arg0: i32, %arg1: i32) -> (i32, i32) {
    %c0_i32 = arith.constant 0 : i32
    %c0_i32_0 = arith.constant 0 : i32
    %c0_i32_1 = arith.constant 0 : i32
    return %c0_i32, %c0_i32_0 : i32, i32
  }
  func.func @transform_6(%arg0: i32, %arg1: i32) -> (i32, i32) {
    %c0_i32 = arith.constant 0 : i32
    %c0_i32_0 = arith.constant 0 : i32
    %c0_i32_1 = arith.constant 0 : i32
    return %c0_i32, %c0_i32_0 : i32, i32
  }
  func.func @transform_7(%arg0: i32, %arg1: i32) -> (i32, i32) {
    %c0_i32 = arith.constant 0 : i32
    %c0_i32_0 = arith.constant 0 : i32
    %c0_i32_1 = arith.constant 0 : i32
    return %c0_i32, %c0_i32_0 : i32, i32
  }
  func.func @transform_8(%arg0: i32, %arg1: i32) -> (i32, i32) {
    %c0_i32 = arith.constant 0 : i32
    %c0_i32_0 = arith.constant 0 : i32
    %c0_i32_1 = arith.constant 0 : i32
    return %c0_i32, %c0_i32_0 : i32, i32
  }
  func.func @transform_9(%arg0: i32, %arg1: i32) -> (i32, i32, i32) {
    %c0_i32 = arith.constant 0 : i32
    %c0_i32_0 = arith.constant 0 : i32
    return %arg1, %c0_i32, %arg0 : i32, i32, i32
  }
}

</mosaic_0001>

<bundles_post_ra>
// kernel: tpu_custom_call.1
= control target key start
LH: loop header
LB: loop body
LE: loop exit
PB: predicated region body
PF: predicated region fallthrough
CT: control target
= control target key end

     0   :  { %s1345_s0 = inlined_call_operand.vmem [shape: bf16[4,128], index: 0, kind: input, shape index: {}]   ;;  %s1346_s1 = inlined_call_operand.vmem [shape: bf16[8,3,128], index: 1, kind: input, shape index: {}]   ;;  %s1347_s2 = inlined_call_operand.vmem [shape: f32[32,4], index: 2, kind: input, shape index: {}]   ;;  %s1348_s3 = inlined_call_operand.vmem [shape: f32[32,3], index: 3, kind: input, shape index: {}]   ;;  %s1349_s4 = inlined_call_operand.vmem [shape: f32[32,1], index: 4, kind: input, shape index: {}]   ;;  %s1350_s5 = inlined_call_operand.vmem [shape: f32[20,32], index: 5, kind: input, shape index: {}]   ;;  %s1351_s6 = inlined_call_operand.vmem [shape: f32[20,1], index: 6, kind: input, shape index: {}]   ;;  %s1352_s7 = inlined_call_operand.vmem [shape: f32[20,1], index: 7, kind: input, shape index: {}]   ;;  %s1353_s8 = inlined_call_operand.<no memory space> [shape: f32[1,1], index: 8, kind: input, shape index: {}]   ;;  %s1354_s9 = inlined_call_operand.hbm [shape: f32[8,1,128], index: 9, kind: output, shape index: {}]  }
   0x1   :  { %v14_v0 = vstv %s1353_s8 }
   0x2   :  { %15 = vst [vmem:[#allocation2] sm:$0x1] %v14_v0 }
   0x3   :  { %16 = vsyncpa [#allocation4], 0 }
   0x4   :  { %18 = vsyncpa [#allocation4 + $0x1], 0  ;;  %s1153_s11 = smov 0   ;;  %s1155_s12 = smov 0  }
   0x5   :  { %s1157_s13 = smov 0   ;;  %s1159_s14 = smov 0  }
   0x6   :  { %s1161_s15 = smov 0   ;;  %s1163_s16 = smov 0  }
   0x7 LB: > { %s871_s8 = sadd.s32 4294967295, %s1093_s16   ;;  %s872_s17 = sadd.s32 4294967294, %s1093_s16   ;;  %s1093_s16 = sphi %s1163_s16, %s24_s16   ;;  %s1089_s15 = sphi %s1161_s15, %s1364_s15   ;;  %s1085_s14 = sphi %s1159_s14, %s1363_s14   ;;  %s1081_s13 = sphi %s1157_s13, %s1362_s13   ;;  %s1077_s12 = sphi %s1155_s12, %s1361_s12   ;;  %s1073_s11 = sphi %s1153_s11, %s1360_s11  }
   0x8   : > { %s33_s18 = sadd.s32 1, %s1089_s15  ;;  %s246_s19 = sadd.s32 1, %s1081_s13 }
   0x9   : > { %p34_p0 = scmp.ge.s32.totalorder %s33_s18, 8  ;;  %p256_p1 = scmp.ne.s32.totalorder %s1081_s13, %s1077_s12 }
   0xa   : > { %p257_p2 = scmp.eq.s32.totalorder %s871_s8, 7  ;;  %p262_p3 = scmp.ne.s32.totalorder %s1077_s12, %s1073_s11 }
   0xb   : > { %s1366_s18 = smov (%p34_p0, %s33_s18), 0  ;;  %p263_p5 = scmp.eq.s32.totalorder %s872_s17, 7 }
   0xc   : > { %1356 = sst [smem:[#allocation6_spill]] %s1366_s18  ;;  %p1193_p4 = por %p257_p2, %p256_p1 }
   0xd   : > { %s241_s21 = ssub.s32 %s1089_s15, %s1366_s18  ;;  %p876_p6 = scmp.ge.s32.totalorder %s1093_s16, 1 }
   0xe   : > { %p244_p7 = scmp.eq.s32.totalorder %s241_s21, 0  ;;  %p1200_p8 = por %p263_p5, %p262_p3 }
   0xf   : > { %p319_p9 = scmp.lt.s32.totalorder %s1093_s16, 9 }
  0x10   : > { %s1206_s23 = scalar_select %p244_p7, %s1081_s13, %s246_s19  }
  0x11   : > { %p320_p10 = pnand %p876_p6, %p319_p9 }
  0x12   : > { %p364_p11 = scmp.lt.s32.totalorder (!%p320_p10), %s1085_s14, 7  ;;  %v379_v1 = vld [vmem:[%s1348_s3] sm:$0xff] (!%p320_p10)  ;;  %vm383_vm0 = vcmask (!%p320_p10), 23552   ;;  %v1095_v2 = vmov (!%p320_p10), 0   ;;  %v589_v5 = vld [vmem:[%s1349_s4 + $0x10] sm:$0xff] (!%p320_p10)  ;;  %v588_v6 = vld [vmem:[%s1349_s4 + $0x8] sm:$0xff] (!%p320_p10) }
  0x13   : > { %323 = sbr.rel (%p320_p10) target bundleno = 526 (0x20e), region = 56  ;;  %913 = vmatprep.mubr.msk.f32.mxu0 (!%p320_p10), %vm383_vm0, %v379_v1  ;;  %1013 = vset.pattern.permute.xlu0 (!%p320_p10), %v1095_v2  ;;  %v587_v3 = vld [vmem:[%s1349_s4] sm:$0xff] (!%p320_p10)  ;;  %vm396_vm1 = vcmask (!%p320_p10), 1042432   ;;  %v590_v8 = vld [vmem:[%s1349_s4 + $0x18] sm:$0xff] (!%p320_p10)  ;;  %v380_v11 = vld [vmem:[%s1348_s3 + $0x8] sm:$0xff] (!%p320_p10)  ;;  %vm498_vm2 = vcmask (!%p320_p10), 1043456  }
  0x14   : > { %1014 = vset.pattern.permute.xlu1 (!%p320_p10), %v1095_v2  ;;  %v371_v4 = vld [vmem:[%s1345_s0] sm:$0x3] (!%p320_p10)  ;;  %593 = vperm.xlu0 (!%p320_p10), %1013, %v587_v3   ;;  %v381_v12 = vld [vmem:[%s1348_s3 + $0x10] sm:$0xff] (!%p320_p10)  ;;  %v623_v14 = vld [vmem:[%s1351_s6 + $0x8] sm:$0xff] (!%p320_p10)  ;;  %vm485_vm3 = vcmask (!%p320_p10), 31744   ;;  %v1096_v25 = vmov (!%p320_p10), 0.0|0.0  }
  0x15   : > { %603 = vperm.xlu1 (!%p320_p10), %1014, %v589_v5   ;;  %v372_v10 = vunpack.c.l.bf16 (!%p320_p10), %v371_v4  ;;  %v622_v13 = vld [vmem:[%s1351_s6] sm:$0xff] (!%p320_p10)  ;;  %v382_v15 = vld [vmem:[%s1348_s3 + $0x18] sm:$0xff] (!%p320_p10)  ;;  %v624_v17 = vld [vmem:[%s1351_s6 + $0x10] sm:$0xf] (!%p320_p10)  ;;  %944 = vmatprep.subr.bf16.mxu1 (!%p320_p10), %v1096_v25  ;;  %vm1097_vm4 = vmmov (!%p320_p10), 0   ;;  %v1098_v26 = vmov (!%p320_p10), 0.0  }
  0x16   : > { %v375_v16 = vld [vmem:[%s1347_s2] sm:$0xff] (!%p320_p10)  ;;  %v376_v19 = vld [vmem:[%s1347_s2 + $0x8] sm:$0xff] (!%p320_p10)  ;;  %v377_v20 = vld [vmem:[%s1347_s2 + $0x10] sm:$0xff] (!%p320_p10)  ;;  %935 = vmatprep.mubr.msk.f32.mxu1 (!%p320_p10), %vm1097_vm4, %v1098_v26  ;;  %vm640_vm5 = vcmask (!%p320_p10), 261120   ;;  %s358_s17 = sand.u32 (!%p320_p10), 1, %s1077_s12   ;;  %s891_s19 = sshll.u32 (!%p320_p10), %s1085_s14, 4 }
  0x17   : > { %v733_v18 = vld [vmem:[%s1352_s7] sm:$0xff] (!%p320_p10)  ;;  %v734_v21 = vld [vmem:[%s1352_s7 + $0x8] sm:$0xff] (!%p320_p10)  ;;  %v735_v22 = vld [vmem:[%s1352_s7 + $0x10] sm:$0xf] (!%p320_p10)  ;;  %s359_s21 = scalar_lea.vmem (!%p320_p10), [#allocation3], %s358_s17  ;;  %s1298_s27 = scalar_lea.hbm (!%p320_p10), %s1354_s9, %s891_s19 }
  0x18   : > { %598 = vperm.xlu0 (!%p320_p10), %1013, %v588_v6   ;;  %v378_v23 = vld [vmem:[%s1347_s2 + $0x18] sm:$0xff] (!%p320_p10)  ;;  %v763_v24 = vld [vmem:[#allocation2] sm:$0x1] (!%p320_p10)  ;;  %v620_v46 = vld [vmem:[%s1350_s5 + $0x8] sm:$0xff] (!%p320_p10)  ;;  %s776_s28 = scalar_lea.sflag (!%p320_p10), [#allocation4], %s358_s17 }
  0x19   : > { %608 = vperm.xlu1 (!%p320_p10), %1014, %v590_v8   ;;  %v619_v45 = vld [vmem:[%s1350_s5] sm:$0xff] (!%p320_p10)  ;;  %v621_v47 = vld [vmem:[%s1350_s5 + $0x10] sm:$0xf] (!%p320_p10) }
  0x1a   : > { %s365_s26 = scalar_select %p364_p11, %s1085_s14, 7 }
  0x1b   : > { %s1099_s14 = smov [#allocation3]  }
  0x1c   : > { %s877_s29 = sshll.u32 %s365_s26, 1  ;;  %627 = vperm.xlu0 %1013, %v622_v13  }
  0x1d   : > { %s370_s24 = scalar_lea.vmem %s1346_s1, %s877_s29  ;;  %632 = vperm.xlu1 %1014, %v623_v14   ;;  %s1019_s29 = sshll.u32 %s1099_s14, 4  ;;  %s1020_s29 = int_to_ptr.vmem [resolvable:$false] %s1019_s29 }
  0x1e   : > { %v373_v7 = vld [vmem:[%s370_s24] sm:$0x3]  ;;  %s789_s24 = sshll.u32 %s359_s21, 4  ;;  %s1021_s10 = scalar_lea.vmem %s1020_s29, 32  ;;  %s1300_s24 = int_to_ptr.vmem [resolvable:$true] %s789_s24 }
  0x1f   : > { %v374_v9 = vunpack.c.l.bf16 %v373_v7  ;;  %v769_v7 = vlaneseq  ;;  %s1015_s30 = scalar_lea.vmem %s1300_s24, 16  ;;  %p1022_p1 = scmp.lt.s32.totalorder %s1300_s24, %s1020_s29 }
  0x20   : > { %637 = vperm.xlu0 %1013, %v624_v17   ;;  %p1016_p12 = scmp.ne.s32.totalorder %s1300_s24, %s1015_s30  ;;  %p1023_p2 = scmp.lt.s32.totalorder %s1021_s10, %s1015_s30 }
  0x21   : > { %911 = vmatprep.subr.msk.mxu0 %vm396_vm1, %v374_v9  ;;  %738 = vperm.xlu1 %1014, %v733_v18  }
  0x22   : > { %912 = vmatpush3.msk.msra.mxu0 %vm396_vm1, %v374_v9  ;;  %p1017_p13 = pnand %p1016_p12, %p1193_p4  ;;  %p1024_p3 = por %p1023_p2, %p1022_p1 }
  0x23   : > { %914 = vmatmul.mubr.msk.f32.vlgmr.msra.gmra.mrb[0].mxu0 %vm383_vm0, %v380_v11  ;;  %919 = vmatprep.subr.msk.mxu0 %vm498_vm2, %v372_v10 }
  0x24   : > { %920 = vmatpush3.msk.msra.mxu0 %vm498_vm2, %v372_v10  ;;  %916 = vmatprep.mubr.msk.f32.mxu0 %vm383_vm0, %v381_v12  ;;  %v770_v10 = vshrl.u32 %v769_v7, 7  ;;  %p1018_p0 = pneg %p1017_p13 }
  0x25   : > { %743 = vperm.xlu0 %1013, %v734_v21   ;;  %748 = vperm.xlu1 %1014, %v735_v22  }
  0x26   : > { %v771_v13 = vsub.s32 0, %v770_v10  ;;  %p1025_p5 = pnand %p1024_p3, %p1018_p0 }
  0x27   : > { %917 = vmatmul.mubr.msk.f32.gmra.mrb[2].mxu0 %vm383_vm0, %v382_v15 }
  0x28   : > { %921 = vmatprep.mubr.msk.f32.mxu0 %vm485_vm3, %v375_v16 }
  0x29   : > { %766 = vperm.xlu0 %1013, %v763_v24  }
  0x2b   : > { %922 = vmatmul.mubr.msk.f32.vlgmr.msra.gmra.mrb[0].mxu0 %vm485_vm3, %v376_v19 }
  0x2c   : > { %924 = vmatprep.mubr.msk.f32.mxu0 %vm485_vm3, %v377_v20 }
  0x2f   : > { %925 = vmatmul.mubr.msk.f32.gmra.mrb[2].mxu0 %vm485_vm3, %v378_v23 }
  0x93   : > { %v594_v27 = vpop.permute.xlu0 %593 }
  0x94   : > { %v604_v28 = vpop.permute.xlu1 %603 }
  0x97   : > { %v599_v29 = vpop.permute.xlu0 %598 }
  0x98   : > { %v609_v35 = vpop.permute.xlu1 %608 }
  0x9b   : > { %v628_v48 = vpop.permute.xlu0 %627 }
  0x9c   : > { %v633_v49 = vpop.permute.xlu1 %632 }
  0x9f   : > { %v638_v53 = vpop.permute.xlu0 %637 }
  0xa0   : > { %v739_v58 = vpop.permute.xlu1 %738 }
  0xa4   : > { %v744_v60 = vpop.permute.xlu0 %743  ;;  %v749_v4 = vpop.permute.xlu1 %748 }
  0xa8   : > { %v767_v15 = vpop.permute.xlu0 %766 }
  0xa9   : > { %v772_v17 = vrot.slane %v767_v15, %v771_v13 }
  0xfe   : > { %v923_v30 = vpop.f32.mrb[0].mxu0 }
  0xff   : > { %v612_v31 = vadd.f32 %v923_v30, %v599_v29  ;;  %v568_v32 = vpop.f32.mrb[1].mxu0 }
 0x100   : > { %v611_v33 = vadd.f32 %v594_v27, %v568_v32 }
 0x101   : > { %v616_v34 = vmax.f32 %v612_v31, 0.0 }
 0x102   : > { %v615_v36 = vmax.f32 %v611_v33, 0.0  ;;  %v926_v37 = vpop.f32.mrb[2].mxu0 }
 0x103   : > { %v614_v38 = vadd.f32 %v926_v37, %v609_v35  ;;  %v578_v39 = vpop.f32.mrb[3].mxu0 }
 0x104   : > { %v613_v40 = vadd.f32 %v604_v28, %v578_v39  ;;  %v945_v41 = vpack.c.bf16 %v616_v34, %v615_v36 }
 0x105   : > { %v618_v42 = vmax.f32 %v614_v38, 0.0 }
 0x106   : > { %v617_v43 = vmax.f32 %v613_v40, 0.0  ;;  %946 = vmatpush3.bf16.msra.mxu1 %v945_v41 }
 0x107   : > { %947 = vmatprep.subr.bf16.mxu1 %v1096_v25 }
 0x108   : > { %v948_v44 = vpack.c.bf16 %v618_v42, %v617_v43 }
 0x10a   : > { %949 = vmatpush3.bf16.msra.mxu1 %v948_v44 }
 0x10d   : > { %936 = vmatmul.mubr.msk.f32.vlgmr.msra.gmra.mrb[0].mxu1 %vm640_vm5, %v619_v45 }
 0x10e   : > { %938 = vmatprep.mubr.msk.f32.mxu1 %vm1097_vm4, %v1098_v26 }
 0x111   : > { %939 = vmatmul.mubr.msk.f32.gmra.mrb[2].mxu1 %vm640_vm5, %v620_v46 }
 0x112   : > { %941 = vmatprep.mubr.msk.f32.mxu1 %vm1097_vm4, %v1098_v26 }
 0x115   : > { %942 = vmatmul.mubr.msk.f32.gmra.mrb[4].mxu1 %vm640_vm5, %v621_v47 }
 0x1e0   : > { %v716_v50 = vpop.f32.mrb[0].mxu1 }
 0x1e1   : > { %v717_v51 = vadd.f32 %v716_v50, %v628_v48  ;;  %v937_v52 = vpop.f32.mrb[1].mxu1 }
 0x1e3   : > { %v730_v55 = vmax.f32 %v717_v51, 0.0 }
 0x1e4   : > { %v721_v54 = vpop.f32.mrb[2].mxu1 }
 0x1e5   : > { %v722_v56 = vadd.f32 %v721_v54, %v633_v49  ;;  %v940_v57 = vpop.f32.mrb[3].mxu1  ;;  %v751_v62 = vmul.f32 %v739_v58, %v730_v55 }
 0x1e7   : > { %v731_v59 = vmax.f32 %v722_v56, 0.0 }
 0x1e8   : > { %v726_v61 = vpop.f32.mrb[4].mxu1 }
 0x1e9   : > { %v752_v63 = vmul.f32 %v744_v60, %v731_v59  ;;  %v727_v0 = vadd.f32 %v726_v61, %v638_v53  ;;  %v943_v1 = vpop.f32.mrb[5].mxu1 }
 0x1eb   : > { %v754_v2 = vadd.f32 %v752_v63, %v751_v62  ;;  %v732_v3 = vmax.f32 %v727_v0, 0.0 }
 0x1ed   : > { %v753_v5 = vmul.f32 %v749_v4, %v732_v3 }
 0x1ef   : > { %v755_v6 = vsel %vm498_vm2, %v753_v5, 0.0 }
 0x1f0   : > { %v756_v8 = vadd.f32 %v755_v6, %v754_v2 }
 0x1f2   : > { %v757_v9 = vrot.slane %v756_v8, 4 }
 0x1f4   : > { %v758_v11 = vadd.f32 %v757_v9, %v756_v8 }
 0x1f6   : > { %v759_v12 = vrot.slane %v758_v11, 2 }
 0x1f8   : > { %v760_v14 = vadd.f32 %v759_v12, %v758_v11 }
 0x1fa   : > { %v761_v16 = vrot.slane %v760_v14, 1 }
 0x1fc   : > { %v762_v18 = vadd.f32 %v761_v16, %v760_v14 }
 0x1fe   : > { %v773_v19 = vadd.f32 %v772_v17, %v762_v18 }
 0x200   : > { %774 = vst [vmem:[%s359_s21] sm:$0x1] %v773_v19 }
 0x201   : > { %1028 = shalt.err (!%p1025_p5)
}
 0x202   : > { %s1029_s18 = scalar_lea.hbm %s1298_s27, 16  ;;  %s1033_s19 = scalar_lea.hbm %s1354_s9, 128 }
 0x203   : > { %p1030_p6 = scmp.ne.s32.totalorder %s1298_s27, %s1029_s18  ;;  %p1034_p10 = scmp.lt.u32.totalorder %s1298_s27, %s1354_s9 }
 0x204   : > { %p1035_p11 = scmp.lt.u32.totalorder %s1033_s19, %s1029_s18  ;;  %p1037_p13 = scmp.lt.u32.totalorder %s1029_s18, %s1298_s27 }
 0x205   : > { %p1031_p7 = pnand %p1030_p6, %p1193_p4 }
 0x206   : > { %p1036_p12 = por %p1035_p11, %p1034_p10 }
 0x207   : > { %p1032_p9 = pneg %p1031_p7 }
 0x208   : > { %p1038_p0 = por %p1037_p13, %p1036_p12 }
 0x20a   : > { %p1039_p1 = pnand %p1038_p0, %p1032_p9 }
 0x20c   : > { %1042 = shalt.err (!%p1039_p1)
}
 0x20d   : > { %954 = dma.vmem_to_hbm [thread:$0]  (%p1193_p4), %s1300_s24, 16, %s1298_s27, %s776_s28  }
 0x20e PF: > { %p960_p2 = scmp.ge.s32.totalorder %s1093_s16, 2  ;;  %s801_s26 = sand.u32 1, %s1073_s11  }
 0x20f   : > { %s802_s30 = scalar_lea.sflag [#allocation4], %s801_s26 }
 0x210   : > { %p957_p3 = pnand %p960_p2, %p1200_p8 }
 0x212   : > { %1068 = dma.done.wait (!%p957_p3), %s802_s30, 16  }
 0x213   : > { %1070 = vsyncadd (!%p957_p3), %s802_s30, 4294967280  ;;  %s24_s16 = sadd.s32 1, %s1093_s16   ;;  %s1359_s20 = sld [smem:[#allocation6_spill]] }
 0x214   : > { %p21_p5 = scmp.ge.s32.totalorder %s24_s16, 10   ;;  %s1360_s11 = smov %s1077_s12 }
 0x215   : > { %s1361_s12 = smov %s1081_s13  ;;  %s1362_s13 = smov %s1206_s23 }
 0x216   : > { %s1363_s14 = smov %s1089_s15  ;;  %23 = sbr.rel (!%p21_p5) target bundleno = 7 (0x7), region = 94 }
 0x219   : > { %s1364_s15 = smov %s1359_s20 }
 0x21d   :  { %806 = vsyncpa [#allocation4], 1 }
 0x21e   :  { %808 = vsyncpa [#allocation4 + $0x1], 1 }

</bundles_post_ra>
